<compile_context>
chip_gen: v5e
topology: v5e:2x2
jax: 0.10.0
libtpu: 0.0.40
codegen_flags: <defaults>
</compile_context>

<pallas_src>
import jax
import jax.numpy as jnp
import numpy as np
from jax.experimental import pallas as pl
from jax.experimental.pallas import tpu as pltpu

LANES = 128
SUBLANES = 8
MAX_TILE_ROWS = 1024          # 1024*128*4 B = 512 KiB per f32 input tile


def _cdiv(a, b):
    return -(-a // b)


def _round_up(a, b):
    return _cdiv(a, b) * b


def _absmax_kernel(p_ref, g_ref, out_ref):
    """Per-block partial max of |pred - gt|, written as a lane-dense (8,128) block."""
    d = jnp.abs(p_ref[...] - g_ref[...])                 # (TR, 128)
    tr, ln = d.shape
    out_ref[...] = jnp.max(d.reshape(tr // SUBLANES, SUBLANES, ln), axis=0)


def _berhu_kernel(c_ref, p_ref, g_ref, m_ref, bsum_ref, msum_ref, mcnt_ref):
    """Per-block partial sums: berHu(|pred-gt|; C), mask, (mask > 0)."""
    c = c_ref[0, 0]                                      # scalar threshold (SMEM)
    d = jnp.abs(p_ref[...] - g_ref[...])                 # (TR, 128)
    inv2c = 0.5 / c                                      # one scalar divide
    quad = (d * d + c * c) * inv2c
    berhu = jnp.where(d < c, d, quad)

    m = m_ref[...].astype(jnp.float32)                   # cast narrow mask in VMEM
    tr, ln = d.shape
    grp = lambda x: x.reshape(tr // SUBLANES, SUBLANES, ln)

    bsum_ref[...] = jnp.sum(grp(berhu), axis=0)
    msum_ref[...] = jnp.sum(grp(m), axis=0)
    mcnt_ref[...] = jnp.sum(grp((m > 0.0).astype(jnp.float32)), axis=0)


def _to_lane_dense(flat, r_pad):
    """Zero-pad a 1-D array and reshape to (r_pad, 128) (lane-dense)."""
    total = r_pad * LANES
    flat = jnp.pad(flat, (0, total - flat.shape[0]))
    return flat.reshape(r_pad, LANES)


@jax.jit
def inverse_huber_loss_with_mask(pred, gt, mask):
    """Pallas implementation of inverse_huber_loss_with_mask.forward(pred, gt, mask)."""
    n_pred = int(np.prod(pred.shape))
    n_mask = int(np.prod(mask.shape))

    p = pred.reshape(-1).astype(jnp.float32)
    g = gt.reshape(-1).astype(jnp.float32)
    m = mask.reshape(-1)                                 # keep caller dtype (narrow stays narrow)

    rows = max(_cdiv(n_pred, LANES), _cdiv(n_mask, LANES), 1)
    tr = min(MAX_TILE_ROWS, _round_up(rows, SUBLANES))   # tile rows (multiple of 8)
    r_pad = _round_up(rows, tr)
    grid = r_pad // tr

    p2 = _to_lane_dense(p, r_pad)
    g2 = _to_lane_dense(g, r_pad)
    m2 = _to_lane_dense(m, r_pad)

    in_block = pl.BlockSpec((tr, LANES), lambda i: (i, 0))
    out_block = pl.BlockSpec((SUBLANES, LANES), lambda i: (i, 0))
    partial_shape = jax.ShapeDtypeStruct((grid * SUBLANES, LANES), jnp.float32)

    # ---- pass 1: global max of |pred - gt| ---------------------------------
    max_part = pl.pallas_call(
        _absmax_kernel,
        out_shape=partial_shape,
        grid=(grid,),
        in_specs=[in_block, in_block],
        out_specs=out_block,
        compiler_params=pltpu.CompilerParams(dimension_semantics=("parallel",)),
    )(p2, g2)

    c = (0.2 * jnp.max(max_part)).reshape(1, 1).astype(jnp.float32)

    # ---- pass 2: berHu sum + mask sums -------------------------------------
    bsum, msum, mcnt = pl.pallas_call(
        _berhu_kernel,
        out_shape=(partial_shape, partial_shape, partial_shape),
        grid=(grid,),
        in_specs=[
            pl.BlockSpec(memory_space=pltpu.MemorySpace.SMEM),  # C scalar
            in_block, in_block, in_block,
        ],
        out_specs=(out_block, out_block, out_block),
        compiler_params=pltpu.CompilerParams(dimension_semantics=("parallel",)),
    )(c, p2, g2, m2)

    # tiny final reductions / scalar division (glue)
    berhu_mean = jnp.sum(bsum) / jnp.float32(n_pred)
    return berhu_mean * jnp.sum(msum) / jnp.sum(mcnt)


def _reference(pred, gt, mask):
    """Pure-JAX reference matching the PyTorch forward exactly."""
    absdiff = jnp.abs(gt.astype(jnp.float32) - pred.astype(jnp.float32))
    c = 0.2 * jnp.max(absdiff)
    loss = jnp.mean(jnp.where(absdiff < c, absdiff,
                              (absdiff * absdiff + c * c) / (2.0 * c)))
    error = mask.astype(jnp.float32) * loss
    return jnp.sum(error) / jnp.sum(mask > 0).astype(jnp.float32)


if __name__ == "__main__":
    key = jax.random.PRNGKey(0)
    k1, k2, k3 = jax.random.split(key, 3)

    N, CH, H, W = 2, 4, 16, 16
    pred = jax.random.normal(k1, (N, CH, H, W), dtype=jnp.float32)
    gt = jax.random.normal(k2, (N, CH, H, W), dtype=jnp.float32)
    mask = (jax.random.uniform(k3, (N, 1, H, W)) > 0.3).astype(jnp.float32)

    out = inverse_huber_loss_with_mask(pred, gt, mask)
    out = jax.block_until_ready(out)

    ref = _reference(pred, gt, mask)
    np.testing.assert_allclose(np.asarray(out), np.asarray(ref),
                               rtol=1e-4, atol=1e-6)
    print("KERNEL_OK")
</pallas_src>

<mosaic_0001>
module attributes {stable_mosaic.version = 11 : i64} {
  func.func @_absmax_kernel(%arg0: i32, %arg1: memref<16x128xf32, #tpu.memory_space<vmem>>, %arg2: memref<16x128xf32, #tpu.memory_space<vmem>>, %arg3: memref<8x128xf32, #tpu.memory_space<vmem>>) attributes {dimension_semantics = [#tpu.dimension_semantics<parallel>], iteration_bounds = array<i64: 1>, scalar_prefetch = 0 : i64, scratch_operands = 0 : i64, tpu.core_type = #tpu.core_type<tc>, window_params = [{transform_indices = @transform_0, window_bounds = array<i64: 16, 128>}, {transform_indices = @transform_1, window_bounds = array<i64: 16, 128>}, {transform_indices = @transform_2, window_bounds = array<i64: 8, 128>}]} {
    %c0 = arith.constant 0 : index
    %c0_0 = arith.constant 0 : index
    %0 = vector.load %arg1[%c0, %c0_0] : memref<16x128xf32, #tpu.memory_space<vmem>>, vector<16x128xf32>
    %c0_1 = arith.constant 0 : index
    %c0_2 = arith.constant 0 : index
    %1 = vector.load %arg2[%c0_1, %c0_2] : memref<16x128xf32, #tpu.memory_space<vmem>>, vector<16x128xf32>
    %2 = arith.subf %0, %1 : vector<16x128xf32>
    %3 = math.absf %2 : vector<16x128xf32>
    %4 = vector.shape_cast %3 : vector<16x128xf32> to vector<2x8x128xf32>
    %cst = arith.constant dense<0xFF800000> : vector<8x128xf32>
    %5 = vector.multi_reduction <maximumf>, %4, %cst [0] : vector<2x8x128xf32> to vector<8x128xf32>
    %c0_3 = arith.constant 0 : index
    %c0_4 = arith.constant 0 : index
    %6 = vector.load %arg3[%c0_3, %c0_4] : memref<8x128xf32, #tpu.memory_space<vmem>>, vector<8x128xf32>
    tpu.vector_store %arg3[%c0_3, %c0_4], %5 {strides = array<i32>} : memref<8x128xf32, #tpu.memory_space<vmem>>, vector<8x128xf32>,
    return
  }
  func.func @transform_0(%arg0: i32) -> (i32, i32) {
    %c0_i32 = arith.constant 0 : i32
    %c0_i32_0 = arith.constant 0 : i32
    return %arg0, %c0_i32 : i32, i32
  }
  func.func @transform_1(%arg0: i32) -> (i32, i32) {
    %c0_i32 = arith.constant 0 : i32
    %c0_i32_0 = arith.constant 0 : i32
    return %arg0, %c0_i32 : i32, i32
  }
  func.func @transform_2(%arg0: i32) -> (i32, i32) {
    %c0_i32 = arith.constant 0 : i32
    %c0_i32_0 = arith.constant 0 : i32
    return %arg0, %c0_i32 : i32, i32
  }
}

module attributes {stable_mosaic.version = 11 : i64} {
  func.func @_berhu_kernel(%arg0: i32, %arg1: memref<1x1xf32, #tpu.memory_space<smem>>, %arg2: memref<16x128xf32, #tpu.memory_space<vmem>>, %arg3: memref<16x128xf32, #tpu.memory_space<vmem>>, %arg4: memref<16x128xf32, #tpu.memory_space<vmem>>, %arg5: memref<8x128xf32, #tpu.memory_space<vmem>>, %arg6: memref<8x128xf32, #tpu.memory_space<vmem>>, %arg7: memref<8x128xf32, #tpu.memory_space<vmem>>) attributes {dimension_semantics = [#tpu.dimension_semantics<parallel>], iteration_bounds = array<i64: 1>, scalar_prefetch = 0 : i64, scratch_operands = 0 : i64, tpu.core_type = #tpu.core_type<tc>, window_params = [{transform_indices = @transform_0, window_bounds = array<i64: 1, 1>}, {transform_indices = @transform_1, window_bounds = array<i64: 16, 128>}, {transform_indices = @transform_2, window_bounds = array<i64: 16, 128>}, {transform_indices = @transform_3, window_bounds = array<i64: 16, 128>}, {transform_indices = @transform_4, window_bounds = array<i64: 8, 128>}, {transform_indices = @transform_5, window_bounds = array<i64: 8, 128>}, {transform_indices = @transform_6, window_bounds = array<i64: 8, 128>}]} {
    %c0 = arith.constant 0 : index
    %c0_0 = arith.constant 0 : index
    %0 = memref.load %arg1[%c0, %c0_0] : memref<1x1xf32, #tpu.memory_space<smem>>
    %c0_1 = arith.constant 0 : index
    %c0_2 = arith.constant 0 : index
    %1 = vector.load %arg2[%c0_1, %c0_2] : memref<16x128xf32, #tpu.memory_space<vmem>>, vector<16x128xf32>
    %c0_3 = arith.constant 0 : index
    %c0_4 = arith.constant 0 : index
    %2 = vector.load %arg3[%c0_3, %c0_4] : memref<16x128xf32, #tpu.memory_space<vmem>>, vector<16x128xf32>
    %3 = arith.subf %1, %2 : vector<16x128xf32>
    %4 = math.absf %3 : vector<16x128xf32>
    %cst = arith.constant 5.000000e-01 : f32
    %5 = arith.divf %cst, %0 : f32
    %6 = arith.mulf %4, %4 : vector<16x128xf32>
    %7 = arith.mulf %0, %0 : f32
    %8 = vector.broadcast %7 : f32 to vector<16x128xf32>
    %9 = arith.addf %6, %8 : vector<16x128xf32>
    %10 = vector.broadcast %5 : f32 to vector<16x128xf32>
    %11 = arith.mulf %9, %10 : vector<16x128xf32>
    %12 = vector.broadcast %0 : f32 to vector<16x128xf32>
    %13 = arith.cmpf olt, %4, %12 : vector<16x128xf32>
    %14 = arith.select %13, %4, %11 : vector<16x128xi1>, vector<16x128xf32>
    %c0_5 = arith.constant 0 : index
    %c0_6 = arith.constant 0 : index
    %15 = vector.load %arg4[%c0_5, %c0_6] : memref<16x128xf32, #tpu.memory_space<vmem>>, vector<16x128xf32>
    %16 = vector.shape_cast %14 : vector<16x128xf32> to vector<2x8x128xf32>
    %cst_7 = arith.constant dense<0.000000e+00> : vector<8x128xf32>
    %17 = vector.multi_reduction <add>, %16, %cst_7 [0] : vector<2x8x128xf32> to vector<8x128xf32>
    %c0_8 = arith.constant 0 : index
    %c0_9 = arith.constant 0 : index
    %18 = vector.load %arg5[%c0_8, %c0_9] : memref<8x128xf32, #tpu.memory_space<vmem>>, vector<8x128xf32>
    tpu.vector_store %arg5[%c0_8, %c0_9], %17 {strides = array<i32>} : memref<8x128xf32, #tpu.memory_space<vmem>>, vector<8x128xf32>,
    %19 = vector.shape_cast %15 : vector<16x128xf32> to vector<2x8x128xf32>
    %cst_10 = arith.constant dense<0.000000e+00> : vector<8x128xf32>
    %20 = vector.multi_reduction <add>, %19, %cst_10 [0] : vector<2x8x128xf32> to vector<8x128xf32>
    %c0_11 = arith.constant 0 : index
    %c0_12 = arith.constant 0 : index
    %21 = vector.load %arg6[%c0_11, %c0_12] : memref<8x128xf32, #tpu.memory_space<vmem>>, vector<8x128xf32>
    tpu.vector_store %arg6[%c0_11, %c0_12], %20 {strides = array<i32>} : memref<8x128xf32, #tpu.memory_space<vmem>>, vector<8x128xf32>,
    %cst_13 = arith.constant 0.000000e+00 : f32
    %22 = vector.broadcast %cst_13 : f32 to vector<16x128xf32>
    %23 = arith.cmpf ogt, %15, %22 : vector<16x128xf32>
    %24 = arith.extui %23 : vector<16x128xi1> to vector<16x128xi32>
    %25 = arith.sitofp %24 : vector<16x128xi32> to vector<16x128xf32>
    %26 = vector.shape_cast %25 : vector<16x128xf32> to vector<2x8x128xf32>
    %cst_14 = arith.constant dense<0.000000e+00> : vector<8x128xf32>
    %27 = vector.multi_reduction <add>, %26, %cst_14 [0] : vector<2x8x128xf32> to vector<8x128xf32>
    %c0_15 = arith.constant 0 : index
    %c0_16 = arith.constant 0 : index
    %28 = vector.load %arg7[%c0_15, %c0_16] : memref<8x128xf32, #tpu.memory_space<vmem>>, vector<8x128xf32>
    tpu.vector_store %arg7[%c0_15, %c0_16], %27 {strides = array<i32>} : memref<8x128xf32, #tpu.memory_space<vmem>>, vector<8x128xf32>,
    return
  }
  func.func @transform_0(%arg0: i32) -> (i32, i32) {
    %c0_i32 = arith.constant 0 : i32
    %c0_i32_0 = arith.constant 0 : i32
    %c0_i32_1 = arith.constant 0 : i32
    return %c0_i32, %c0_i32_0 : i32, i32
  }
  func.func @transform_1(%arg0: i32) -> (i32, i32) {
    %c0_i32 = arith.constant 0 : i32
    %c0_i32_0 = arith.constant 0 : i32
    return %arg0, %c0_i32 : i32, i32
  }
  func.func @transform_2(%arg0: i32) -> (i32, i32) {
    %c0_i32 = arith.constant 0 : i32
    %c0_i32_0 = arith.constant 0 : i32
    return %arg0, %c0_i32 : i32, i32
  }
  func.func @transform_3(%arg0: i32) -> (i32, i32) {
    %c0_i32 = arith.constant 0 : i32
    %c0_i32_0 = arith.constant 0 : i32
    return %arg0, %c0_i32 : i32, i32
  }
  func.func @transform_4(%arg0: i32) -> (i32, i32) {
    %c0_i32 = arith.constant 0 : i32
    %c0_i32_0 = arith.constant 0 : i32
    return %arg0, %c0_i32 : i32, i32
  }
  func.func @transform_5(%arg0: i32) -> (i32, i32) {
    %c0_i32 = arith.constant 0 : i32
    %c0_i32_0 = arith.constant 0 : i32
    return %arg0, %c0_i32 : i32, i32
  }
  func.func @transform_6(%arg0: i32) -> (i32, i32) {
    %c0_i32 = arith.constant 0 : i32
    %c0_i32_0 = arith.constant 0 : i32
    return %arg0, %c0_i32 : i32, i32
  }
}

</mosaic_0001>

<bundles_post_ra>
// kernel: inverse_huber_loss_with_mask.2
= control target key start
LH: loop header
LB: loop body
LE: loop exit
PB: predicated region body
PF: predicated region fallthrough
CT: control target
= control target key end

     0   :  { %s55_s0 = inlined_call_operand.vmem [shape: f32[16,128], index: 0, kind: input, shape index: {}]   ;;  %s56_s1 = inlined_call_operand.vmem [shape: f32[16,128], index: 1, kind: input, shape index: {}]   ;;  %s57_s2 = inlined_call_operand.vmem [shape: f32[8,128], index: 2, kind: output, shape index: {}]  }
   0x1   :  { %v11_v0 = vld [vmem:[%s55_s0] sm:$0xff]  ;;  %v12_v1 = vld [vmem:[%s55_s0 + $0x8] sm:$0xff] }
   0x2   :  { %v13_v2 = vld [vmem:[%s56_s1] sm:$0xff]  ;;  %v14_v3 = vld [vmem:[%s56_s1 + $0x8] sm:$0xff] }
   0x3   :  { %v15_v4 = vsub.f32 %v11_v0, %v13_v2  ;;  %v16_v5 = vsub.f32 %v12_v1, %v14_v3 }
   0x5   :  { %v17_v6 = vand.u32 2147483647, %v15_v4  ;;  %v18_v7 = vand.u32 2147483647, %v16_v5 }
   0x7   :  { %v19_v8 = vmax.f32 %v17_v6, %v18_v7 }
   0x9   :  { %20 = vst [vmem:[%s57_s2] sm:$0xff] %v19_v8 }

// kernel: inverse_huber_loss_with_mask.3
= control target key start
LH: loop header
LB: loop body
LE: loop exit
PB: predicated region body
PF: predicated region fallthrough
CT: control target
= control target key end

     0   :  { %v94_v13 = vmov 0.0   ;;  %s164_s0 = inlined_call_operand.<no memory space> [shape: f32[1,1], index: 0, kind: input, shape index: {}]   ;;  %s165_s3 = inlined_call_operand.vmem [shape: f32[16,128], index: 3, kind: input, shape index: {}]   ;;  %s166_s5 = inlined_call_operand.vmem [shape: f32[8,128], index: 5, kind: output, shape index: {1}]   ;;  %s167_s6 = inlined_call_operand.vmem [shape: f32[8,128], index: 6, kind: output, shape index: {2}]   ;;  %s168_s1 = inlined_call_operand.vmem [shape: f32[16,128], index: 1, kind: input, shape index: {}]   ;;  %s169_s2 = inlined_call_operand.vmem [shape: f32[16,128], index: 2, kind: input, shape index: {}]   ;;  %s170_s4 = inlined_call_operand.vmem [shape: f32[8,128], index: 4, kind: output, shape index: {0}]  }
   0x1   :  { %v30_v0 = vstv %s164_s0  ;;  %v61_v11 = vld [vmem:[%s165_s3] sm:$0xff]  ;;  %v62_v12 = vld [vmem:[%s165_s3 + $0x8] sm:$0xff]  ;;  %s49_s14 = smul.f32 %s164_s0, %s164_s0 }
   0x2   :  { %92 = vrcp.f32 %v30_v0  ;;  %v42_v3 = vand.u32 2147483648, %v30_v0  ;;  %vm36_vm0 = vweird.f32 %v30_v0  ;;  %v40_v5 = vand.u32 2147483647, %v30_v0  ;;  %v22_v18 = vld [vmem:[%s168_s1] sm:$0xff]  ;;  %v23_v19 = vld [vmem:[%s168_s1 + $0x8] sm:$0xff] }
   0x3   :  { %vm67_vm4 = vcmp.gt.f32.partialorder %v61_v11, 0.0  ;;  %vm68_vm5 = vcmp.gt.f32.partialorder %v62_v12, 0.0  ;;  %v65_v16 = vadd.f32 %v62_v12, %v61_v11  ;;  %v24_v20 = vld [vmem:[%s169_s2] sm:$0xff]  ;;  %v25_v21 = vld [vmem:[%s169_s2 + $0x8] sm:$0xff]  ;;  %v50_v28 = vstv %s49_s14 }
   0x4   :  { %v43_v7 = vor.u32 1.1754944e-38, %v42_v3  ;;  %vm41_vm3 = vcmp.eq.f32.partialorder %v40_v5, 8.507059e+37  ;;  %v87_v14 = vsel %vm67_vm4, 1.0, %v94_v13  ;;  %v88_v15 = vsel %vm68_vm5, 1.0, %v94_v13 }
   0x5   :  { %v73_v17 = vadd.f32 %v88_v15, %v87_v14  ;;  %66 = vst [vmem:[%s166_s5] sm:$0xff] %v65_v16  ;;  %v26_v22 = vsub.f32 %v22_v18, %v24_v20  ;;  %v27_v23 = vsub.f32 %v23_v19, %v25_v21 }
   0x7   :  { %74 = vst [vmem:[%s167_s6] sm:$0xff] %v73_v17  ;;  %v28_v24 = vand.u32 2147483647, %v26_v22  ;;  %v29_v25 = vand.u32 2147483647, %v27_v23 }
   0x8   :  { %v93_v1 = vpop.eup %92 }
   0x9   :  { %v32_v2 = vmul.f32 %v93_v1, %v30_v0  ;;  %vm37_vm1 = vweird.f32 %v93_v1  ;;  %v47_v26 = vmul.f32 %v28_v24, %v28_v24  ;;  %v48_v27 = vmul.f32 %v29_v25, %v29_v25 }
   0xa   :  { %vm38_vm2 = vmor %vm36_vm0, %vm37_vm1  ;;  %vm57_vm6 = vcmp.lt.f32.partialorder %v28_v24, %v30_v0  ;;  %vm58_vm7 = vcmp.lt.f32.partialorder %v29_v25, %v30_v0 }
   0xb   :  { %v33_v4 = vsub.f32 1.0, %v32_v2  ;;  %v51_v29 = vadd.f32 %v50_v28, %v47_v26  ;;  %v52_v30 = vadd.f32 %v50_v28, %v48_v27 }
   0xd   :  { %v34_v6 = vmul.f32 %v93_v1, %v33_v4 }
   0xf   :  { %v35_v8 = vadd.f32 %v93_v1, %v34_v6 }
  0x11   :  { %v39_v9 = vsel %vm38_vm2, %v93_v1, %v35_v8 }
  0x12   :  { %v44_v10 = vsel %vm41_vm3, %v43_v7, %v39_v9 }
  0x13   :  { %89 = vpush %v44_v10 }
  0x44   :  { %s90_s1 = spop %89 }
  0x45   :  { %s46_s15 = smul.f32 0.5, %s90_s1 }
  0x47   :  { %v53_v31 = vstv %s46_s15 }
  0x48   :  { %v54_v32 = vmul.f32 %v53_v31, %v51_v29  ;;  %v55_v33 = vmul.f32 %v53_v31, %v52_v30 }
  0x4a   :  { %v59_v34 = vsel %vm57_vm6, %v28_v24, %v54_v32  ;;  %v60_v35 = vsel %vm58_vm7, %v29_v25, %v55_v33 }
  0x4b   :  { %v63_v36 = vadd.f32 %v60_v35, %v59_v34 }
  0x4d   :  { %64 = vst [vmem:[%s170_s4] sm:$0xff] %v63_v36 }

</bundles_post_ra>
